<compile_context>
chip_gen: v5e
topology: v5e:2x2
jax: 0.10.0
libtpu: 0.0.40
codegen_flags: <defaults>
</compile_context>

<pallas_src>
import jax
import jax.numpy as jnp
from jax.experimental import pallas as pl
from jax.experimental.pallas import tpu as pltpu

LANE = 128      # TPU lane width
HID1 = 128      # fc1 out
HID2 = 64       # fc2 out (kept at 64 — NOT padded to 128)
N_CLASSES = 2   # fc3 out (stored as 2 real lanes; w3 columns padded for the dot)


def _round_up(n, m):
    return ((n + m - 1) // m) * m


def mlp_kernel(x_ref, w1_ref, b1_ref, w2_ref, b2_ref, w3_ref, b3_ref, out_ref):
    # x_ref: (tm, D) f32 | w1: (D,128) bf16 | w2: (128,64) bf16 | w3: (64,128) bf16
    # b1: (1,128) f32 | b2: (1,64) f32 | b3: (1,2) f32 | out_ref: (tm, 2) f32
    x = x_ref[...].astype(jnp.bfloat16)          # cast in VMEM, not in HBM

    # fc1 + ReLU (f32 accumulate, f32 bias/ReLU, bf16 into the next MXU op)
    h1 = jnp.dot(x, w1_ref[...], preferred_element_type=jnp.float32) + b1_ref[...]
    h1 = jnp.maximum(h1, 0.0).astype(jnp.bfloat16)

    # fc2 + ReLU (N = 64, unpadded)
    h2 = jnp.dot(h1, w2_ref[...], preferred_element_type=jnp.float32) + b2_ref[...]
    h2 = jnp.maximum(h2, 0.0).astype(jnp.bfloat16)

    # fc3: lane-aligned dot against column-padded w3, then store only the 2 real logits.
    logits = jnp.dot(h2, w3_ref[...], preferred_element_type=jnp.float32)
    out_ref[...] = (logits[:, :N_CLASSES] + b3_ref[...]).astype(out_ref.dtype)


def prepare_params(params):
    """Weights -> bf16 (resident in VMEM), biases -> f32. Only w3's columns are padded."""
    w3 = params["w3"]
    w3 = jnp.pad(w3, ((0, 0), (0, LANE - w3.shape[1])))   # (64, 2) -> (64, 128)
    return {
        "w1": params["w1"].astype(jnp.bfloat16),   # (D, 128)
        "b1": params["b1"].astype(jnp.float32),    # (1, 128)
        "w2": params["w2"].astype(jnp.bfloat16),   # (128, 64)
        "b2": params["b2"].astype(jnp.float32),    # (1, 64)
        "w3": w3.astype(jnp.bfloat16),             # (64, 128) zero-padded cols
        "b3": params["b3"].astype(jnp.float32),    # (1, 2)
    }


def _choose_tm(batch, tm_max=2048):
    """Batch tile: big enough to amortize ~0.35us/step overhead, >=2 tiles for
    moderate/large B (v7x megacore), and sized so padding waste stays < 1 tile."""
    if batch <= 128:
        return batch                       # single block; block dim == full dim is legal
    n_tiles = max(2, -(-batch // tm_max))  # at least 2 grid steps
    tm = _round_up(-(-batch // n_tiles), 8)
    return min(tm, tm_max)


def mlp_classifier_forward(x, padded_params, tm_max=2048):
    """x: (B, input_dim) float32; padded_params: output of prepare_params()."""
    if x.dtype != jnp.float32:
        x = x.astype(jnp.float32)
    B, D = x.shape
    pp = padded_params
    assert pp["w1"].shape[0] == D

    tm = _choose_tm(B, tm_max)
    grid = (pl.cdiv(B, tm),)               # remainder block (if any) is masked by Pallas

    const = lambda arr: pl.BlockSpec(arr.shape, lambda i: (0, 0))  # resident across tiles

    flops = 2 * B * (D * HID1 + HID1 * HID2 + HID2 * LANE)
    bytes_accessed = (
        int(x.size) * x.dtype.itemsize
        + B * N_CLASSES * 4
        + sum(int(v.size) * v.dtype.itemsize for v in pp.values())
    )
    cost = pl.CostEstimate(flops=int(flops), transcendentals=0,
                           bytes_accessed=int(bytes_accessed))

    return pl.pallas_call(
        mlp_kernel,
        out_shape=jax.ShapeDtypeStruct((B, N_CLASSES), jnp.float32),
        grid_spec=pltpu.PrefetchScalarGridSpec(
            num_scalar_prefetch=0,
            grid=grid,
            in_specs=[
                pl.BlockSpec((tm, D), lambda i: (i, 0)),      # x tile (pipelined)
                const(pp["w1"]), const(pp["b1"]),             # weights/biases resident
                const(pp["w2"]), const(pp["b2"]),
                const(pp["w3"]), const(pp["b3"]),
            ],
            out_specs=pl.BlockSpec((tm, N_CLASSES), lambda i: (i, 0)),
        ),
        compiler_params=pltpu.CompilerParams(
            dimension_semantics=("parallel",),
            # ~3-4 MiB of VMEM at tm=2048; default scoped VMEM is plenty on v5e/v6e/v7x.
            # Set vmem_limit_bytes explicitly only if tm_max is pushed past ~4096 (v5e).
        ),
        cost_estimate=cost,
    )(x, pp["w1"], pp["b1"], pp["w2"], pp["b2"], pp["w3"], pp["b3"])


def init_params(key, input_dim):
    """Deterministic init mimicking nn.Linear's uniform(-1/sqrt(in), 1/sqrt(in))."""
    ks = jax.random.split(key, 6)

    def linear(kw, kb, d_in, d_out):
        bound = 1.0 / jnp.sqrt(jnp.float32(d_in))
        w = jax.random.uniform(kw, (d_in, d_out), jnp.float32, -bound, bound)
        b = jax.random.uniform(kb, (1, d_out), jnp.float32, -bound, bound)
        return w, b

    w1, b1 = linear(ks[0], ks[1], input_dim, HID1)
    w2, b2 = linear(ks[2], ks[3], HID1, HID2)
    w3, b3 = linear(ks[4], ks[5], HID2, N_CLASSES)
    return {"w1": w1, "b1": b1, "w2": w2, "b2": b2, "w3": w3, "b3": b3}


def reference_forward(x, p):
    """Pure-JAX reference mimicking the kernel's bf16-input / f32-accumulate numerics."""
    q = lambda a: a.astype(jnp.bfloat16).astype(jnp.float32)
    h1 = jnp.maximum(q(x) @ q(p["w1"]) + p["b1"], 0.0)
    h2 = jnp.maximum(q(h1) @ q(p["w2"]) + p["b2"], 0.0)
    return q(h2) @ q(p["w3"]) + p["b3"]


if __name__ == "__main__":
    key = jax.random.PRNGKey(0)
    k_x, k_p = jax.random.split(key)

    batch, input_dim = 8, 32
    x = jax.random.normal(k_x, (batch, input_dim), jnp.float32)
    params = init_params(k_p, input_dim)
    padded = prepare_params(params)

    out = mlp_classifier_forward(x, padded)
    out = jax.block_until_ready(out)

    ref = reference_forward(x, params)
    assert out.shape == (batch, N_CLASSES)
    assert jnp.allclose(out, ref, atol=1e-3, rtol=1e-3), (
        f"max abs err = {jnp.max(jnp.abs(out - ref))}")

    print("KERNEL_OK")
</pallas_src>

<mosaic_0001>
module attributes {stable_mosaic.version = 11 : i64} {
  func.func @mlp_kernel(%arg0: i32, %arg1: memref<8x32xf32, #tpu.memory_space<vmem>>, %arg2: memref<32x128xbf16, #tpu.memory_space<vmem>>, %arg3: memref<1x128xf32, #tpu.memory_space<vmem>>, %arg4: memref<128x64xbf16, #tpu.memory_space<vmem>>, %arg5: memref<1x64xf32, #tpu.memory_space<vmem>>, %arg6: memref<64x128xbf16, #tpu.memory_space<vmem>>, %arg7: memref<1x2xf32, #tpu.memory_space<vmem>>, %arg8: memref<8x2xf32, #tpu.memory_space<vmem>>) attributes {dimension_semantics = [#tpu.dimension_semantics<parallel>], iteration_bounds = array<i64: 1>, scalar_prefetch = 0 : i64, scratch_operands = 0 : i64, tpu.core_type = #tpu.core_type<tc>, window_params = [{transform_indices = @transform_0, window_bounds = array<i64: 8, 32>}, {pipeline_mode = #tpu.pipeline_mode<synchronous>, transform_indices = @transform_1, window_bounds = array<i64: 32, 128>}, {pipeline_mode = #tpu.pipeline_mode<synchronous>, transform_indices = @transform_2, window_bounds = array<i64: 1, 128>}, {pipeline_mode = #tpu.pipeline_mode<synchronous>, transform_indices = @transform_3, window_bounds = array<i64: 128, 64>}, {pipeline_mode = #tpu.pipeline_mode<synchronous>, transform_indices = @transform_4, window_bounds = array<i64: 1, 64>}, {pipeline_mode = #tpu.pipeline_mode<synchronous>, transform_indices = @transform_5, window_bounds = array<i64: 64, 128>}, {pipeline_mode = #tpu.pipeline_mode<synchronous>, transform_indices = @transform_6, window_bounds = array<i64: 1, 2>}, {transform_indices = @transform_7, window_bounds = array<i64: 8, 2>}]} {
    %c0 = arith.constant 0 : index
    %c0_0 = arith.constant 0 : index
    %0 = vector.load %arg1[%c0, %c0_0] : memref<8x32xf32, #tpu.memory_space<vmem>>, vector<8x32xf32>
    %1 = arith.truncf %0 : vector<8x32xf32> to vector<8x32xbf16>
    %c0_1 = arith.constant 0 : index
    %c0_2 = arith.constant 0 : index
    %2 = vector.load %arg2[%c0_1, %c0_2] : memref<32x128xbf16, #tpu.memory_space<vmem>>, vector<32x128xbf16>
    %cst = arith.constant dense<0.000000e+00> : vector<8x128xf32>
    %3 = tpu.matmul %1, %2, %cst {dimension_numbers = #tpu.dot_dimension_numbers<[1], [0], [0], [1], [0, 0, 1, 1], [], []>} : vector<8x32xbf16>, vector<32x128xbf16>, vector<8x128xf32> -> vector<8x128xf32>
    %c0_3 = arith.constant 0 : index
    %c0_4 = arith.constant 0 : index
    %4 = vector.load %arg3[%c0_3, %c0_4] : memref<1x128xf32, #tpu.memory_space<vmem>>, vector<1x128xf32>
    %5 = vector.broadcast %4 : vector<1x128xf32> to vector<8x128xf32>
    %6 = arith.addf %3, %5 : vector<8x128xf32>
    %cst_5 = arith.constant 0.000000e+00 : f32
    %7 = vector.broadcast %cst_5 : f32 to vector<8x128xf32>
    %8 = arith.maximumf %6, %7 : vector<8x128xf32>
    %9 = arith.truncf %8 : vector<8x128xf32> to vector<8x128xbf16>
    %c0_6 = arith.constant 0 : index
    %c0_7 = arith.constant 0 : index
    %10 = vector.load %arg4[%c0_6, %c0_7] : memref<128x64xbf16, #tpu.memory_space<vmem>>, vector<128x64xbf16>
    %cst_8 = arith.constant dense<0.000000e+00> : vector<8x64xf32>
    %11 = tpu.matmul %9, %10, %cst_8 {dimension_numbers = #tpu.dot_dimension_numbers<[1], [0], [0], [1], [0, 0, 1, 1], [], []>} : vector<8x128xbf16>, vector<128x64xbf16>, vector<8x64xf32> -> vector<8x64xf32>
    %c0_9 = arith.constant 0 : index
    %c0_10 = arith.constant 0 : index
    %12 = vector.load %arg5[%c0_9, %c0_10] : memref<1x64xf32, #tpu.memory_space<vmem>>, vector<1x64xf32>
    %13 = vector.broadcast %12 : vector<1x64xf32> to vector<8x64xf32>
    %14 = arith.addf %11, %13 : vector<8x64xf32>
    %cst_11 = arith.constant 0.000000e+00 : f32
    %15 = vector.broadcast %cst_11 : f32 to vector<8x64xf32>
    %16 = arith.maximumf %14, %15 : vector<8x64xf32>
    %17 = arith.truncf %16 : vector<8x64xf32> to vector<8x64xbf16>
    %c0_12 = arith.constant 0 : index
    %c0_13 = arith.constant 0 : index
    %18 = vector.load %arg6[%c0_12, %c0_13] : memref<64x128xbf16, #tpu.memory_space<vmem>>, vector<64x128xbf16>
    %cst_14 = arith.constant dense<0.000000e+00> : vector<8x128xf32>
    %19 = tpu.matmul %17, %18, %cst_14 {dimension_numbers = #tpu.dot_dimension_numbers<[1], [0], [0], [1], [0, 0, 1, 1], [], []>} : vector<8x64xbf16>, vector<64x128xbf16>, vector<8x128xf32> -> vector<8x128xf32>
    %20 = vector.extract_strided_slice %19 {offsets = [0, 0], sizes = [8, 2], strides = [1, 1]} : vector<8x128xf32> to vector<8x2xf32>
    %c0_15 = arith.constant 0 : index
    %c0_16 = arith.constant 0 : index
    %21 = vector.load %arg7[%c0_15, %c0_16] : memref<1x2xf32, #tpu.memory_space<vmem>>, vector<1x2xf32>
    %22 = vector.broadcast %21 : vector<1x2xf32> to vector<8x2xf32>
    %23 = arith.addf %20, %22 : vector<8x2xf32>
    %c0_17 = arith.constant 0 : index
    %c0_18 = arith.constant 0 : index
    %24 = vector.load %arg8[%c0_17, %c0_18] : memref<8x2xf32, #tpu.memory_space<vmem>>, vector<8x2xf32>
    tpu.vector_store %arg8[%c0_17, %c0_18], %23 {strides = array<i32>} : memref<8x2xf32, #tpu.memory_space<vmem>>, vector<8x2xf32>,
    return
  }
  func.func @transform_0(%arg0: i32) -> (i32, i32) {
    %c0_i32 = arith.constant 0 : i32
    %c0_i32_0 = arith.constant 0 : i32
    return %arg0, %c0_i32 : i32, i32
  }
  func.func @transform_1(%arg0: i32) -> (i32, i32) {
    %c0_i32 = arith.constant 0 : i32
    %c0_i32_0 = arith.constant 0 : i32
    %c0_i32_1 = arith.constant 0 : i32
    return %c0_i32, %c0_i32_0 : i32, i32
  }
  func.func @transform_2(%arg0: i32) -> (i32, i32) {
    %c0_i32 = arith.constant 0 : i32
    %c0_i32_0 = arith.constant 0 : i32
    %c0_i32_1 = arith.constant 0 : i32
    return %c0_i32, %c0_i32_0 : i32, i32
  }
  func.func @transform_3(%arg0: i32) -> (i32, i32) {
    %c0_i32 = arith.constant 0 : i32
    %c0_i32_0 = arith.constant 0 : i32
    %c0_i32_1 = arith.constant 0 : i32
    return %c0_i32, %c0_i32_0 : i32, i32
  }
  func.func @transform_4(%arg0: i32) -> (i32, i32) {
    %c0_i32 = arith.constant 0 : i32
    %c0_i32_0 = arith.constant 0 : i32
    %c0_i32_1 = arith.constant 0 : i32
    return %c0_i32, %c0_i32_0 : i32, i32
  }
  func.func @transform_5(%arg0: i32) -> (i32, i32) {
    %c0_i32 = arith.constant 0 : i32
    %c0_i32_0 = arith.constant 0 : i32
    %c0_i32_1 = arith.constant 0 : i32
    return %c0_i32, %c0_i32_0 : i32, i32
  }
  func.func @transform_6(%arg0: i32) -> (i32, i32) {
    %c0_i32 = arith.constant 0 : i32
    %c0_i32_0 = arith.constant 0 : i32
    %c0_i32_1 = arith.constant 0 : i32
    return %c0_i32, %c0_i32_0 : i32, i32
  }
  func.func @transform_7(%arg0: i32) -> (i32, i32) {
    %c0_i32 = arith.constant 0 : i32
    %c0_i32_0 = arith.constant 0 : i32
    return %arg0, %c0_i32 : i32, i32
  }
}

</mosaic_0001>

<bundles_post_ra>
// kernel: tpu_custom_call.1
= control target key start
LH: loop header
LB: loop body
LE: loop exit
PB: predicated region body
PF: predicated region fallthrough
CT: control target
= control target key end

     0   :  { %vm49_vm0 = vcmask 261120   ;;  %vm183_vm1 = vcmask 523264   ;;  %vm205_vm2 = vcmask 15360   ;;  %s383_s1 = inlined_call_operand.vmem [shape: bf16[32,128], index: 1, kind: input, shape index: {}]   ;;  %s384_s0 = inlined_call_operand.vmem [shape: f32[8,32], index: 0, kind: input, shape index: {}]   ;;  %s385_s3 = inlined_call_operand.vmem [shape: bf16[128,64], index: 3, kind: input, shape index: {}]   ;;  %s386_s2 = inlined_call_operand.vmem [shape: f32[1,128], index: 2, kind: input, shape index: {}]   ;;  %s387_s4 = inlined_call_operand.vmem [shape: f32[1,64], index: 4, kind: input, shape index: {}]   ;;  %s388_s5 = inlined_call_operand.vmem [shape: bf16[64,128], index: 5, kind: input, shape index: {}]   ;;  %s389_s6 = inlined_call_operand.vmem [shape: f32[1,2], index: 6, kind: input, shape index: {}]   ;;  %s390_s7 = inlined_call_operand.vmem [shape: f32[8,2], index: 7, kind: output, shape index: {}]  }
   0x1   :  { %v270_v0 = vld [vmem:[%s383_s1 + $0x8] sm:$0xff]  ;;  %v278_v1 = vld [vmem:[%s385_s3 + $0x38] sm:$0xff]  ;;  %v269_v2 = vld [vmem:[%s383_s1] sm:$0xff] }
   0x2   :  { %59 = vmatpush.bf16.msra.mxu0 %v270_v0  ;;  %v27_v3 = vld [vmem:[%s384_s0] sm:$0xff]  ;;  %136 = vmatpush.bf16.msra.mxu1 %v278_v1  ;;  %v277_v4 = vld [vmem:[%s385_s3 + $0x30] sm:$0xff]  ;;  %v276_v6 = vld [vmem:[%s385_s3 + $0x28] sm:$0xff] }
   0x3   :  { %v28_v5 = vpack.c.bf16 %v27_v3, %v27_v3  ;;  %v275_v7 = vld [vmem:[%s385_s3 + $0x20] sm:$0xff]  ;;  %v274_v8 = vld [vmem:[%s385_s3 + $0x18] sm:$0xff]  ;;  %v273_v9 = vld [vmem:[%s385_s3 + $0x10] sm:$0xff] }
   0x4   :  { %v272_v10 = vld [vmem:[%s385_s3 + $0x8] sm:$0xff]  ;;  %v271_v11 = vld [vmem:[%s385_s3] sm:$0xff]  ;;  %v282_v12 = vld [vmem:[%s388_s5 + $0x18] sm:$0xff] }
   0x5   :  { %191 = vmatpush.bf16.msra.mxu2 %v282_v12  ;;  %v281_v13 = vld [vmem:[%s388_s5 + $0x10] sm:$0xff]  ;;  %v283_v14 = vld [vmem:[%s386_s2] ss:$0 sm:$0xff]  ;;  %v280_v20 = vld [vmem:[%s388_s5 + $0x8] sm:$0xff] }
   0x6   :  { %60 = vmatpush.bf16.msra.mxu0 %v269_v2  ;;  %137 = vmatpush.bf16.msra.mxu1 %v277_v4  ;;  %v279_v21 = vld [vmem:[%s388_s5] sm:$0xff] }
   0x7   :  { %v284_v22 = vld [vmem:[%s387_s4] ss:$0 sm:$0xff] }
   0x8   :  { %v285_v28 = vld [vmem:[%s389_s6] ss:$0 sm:$0xff] }
   0x9   :  { %219 = vmatmul.msk.bf16.vlgmr.msra.gmra.mxu0 %vm49_vm0, %v28_v5  ;;  %192 = vmatpush.bf16.msra.mxu2 %v281_v13 }
   0xa   :  { %138 = vmatpush.bf16.msra.mxu1 %v276_v6 }
   0xd   :  { %193 = vmatpush.bf16.msra.mxu2 %v280_v20 }
   0xe   :  { %139 = vmatpush.bf16.msra.mxu1 %v275_v7 }
  0x11   :  { %194 = vmatpush.bf16.msra.mxu2 %v279_v21 }
  0x12   :  { %140 = vmatpush.bf16.msra.mxu1 %v274_v8 }
  0x16   :  { %141 = vmatpush.bf16.msra.mxu1 %v273_v9 }
  0x1a   :  { %142 = vmatpush.bf16.msra.mxu1 %v272_v10 }
  0x1e   :  { %143 = vmatpush.bf16.msra.mxu1 %v271_v11 }
  0x86   :  { %v62_v15 = vpop.f32.mrf.mxu0 }
  0x87   :  { %v63_v16 = vadd.f32 %v283_v14, %v62_v15 }
  0x89   :  { %v66_v17 = vmax.f32 %v63_v16, 0.0 }
  0x8b   :  { %v67_v18 = vpack.c.bf16 %v66_v17, %v66_v17 }
  0x8d   :  { %144 = vmatmul.bf16.vlgmr.msra.gmra.mxu1 %v67_v18 }
  0x8e   :  { %v64_v19 = vpop.f32.mrf.mxu0 }
 0x10a   :  { %v145_v23 = vpop.f32.mrf.mxu1 }
 0x10b   :  { %v146_v24 = vadd.f32 %v284_v22, %v145_v23 }
 0x10d   :  { %v149_v25 = vmax.f32 %v146_v24, 0.0 }
 0x10f   :  { %v150_v26 = vpack.c.bf16 %v149_v25, %v149_v25 }
 0x111   :  { %268 = vmatmul.msk.bf16.vlgmr.msra.gmra.mxu2 %vm183_vm1, %v150_v26 }
 0x112   :  { %v147_v27 = vpop.f32.mrf.mxu1 }
 0x194   :  { %v196_v29 = vpop.f32.mrf.mxu2 }
 0x195   :  { %v204_v30 = vadd.f32 %v285_v28, %v196_v29 }
 0x197   :  { %206 = vst.msk [vmem:[%s390_s7] sm:$0xff] %vm205_vm2, %v204_v30 }
 0x19c   :  { %v198_v31 = vpop.f32.mrf.mxu2 }

</bundles_post_ra>
